<compile_context>
chip_gen: v7x
topology: tpu7x:2x2x1
jax: 0.10.0
libtpu: 0.0.40
codegen_flags: <defaults>
</compile_context>

<pallas_src>
import math
import functools

import jax
import jax.numpy as jnp
from jax.experimental import pallas as pl
from jax.experimental.pallas import tpu as pltpu


def _layernorm(x, gamma, beta, eps=1e-5):
    mean = jnp.mean(x, axis=-1, keepdims=True)
    var = jnp.mean(jnp.square(x - mean), axis=-1, keepdims=True)
    return (x - mean) * jax.lax.rsqrt(var + eps) * gamma + beta


def _encoder_kernel(Bt, S, E, H,
                    x_ref, pe_ref,
                    wqkv_ref, bqkv_ref,
                    wo_ref, bo_ref,
                    ln1g_ref, ln1b_ref,
                    w1_ref, b1_ref, w2_ref, b2_ref,
                    ln2g_ref, ln2b_ref,
                    o_ref):
    Dh = E // H
    N = Bt * S
    scale = 1.0 / math.sqrt(Dh)
    cdt = wqkv_ref.dtype        # compute dtype for MXU operands (f32 or bf16)

    # Positional encoding add (broadcast over the Bt batch rows of this block),
    # then flatten (Bt, S) -> rows so projections/FFN see a tall MXU M dim.
    x = x_ref[...].astype(jnp.float32) + pe_ref[...].astype(jnp.float32)[None]
    x = x.reshape(N, E)

    # --- fused QKV projection: one (N, E) x (E, 3E) MXU pass -----------------
    qkv = jnp.dot(x.astype(cdt), wqkv_ref[...],
                  preferred_element_type=jnp.float32)
    qkv = qkv + bqkv_ref[...].astype(jnp.float32)
    q = qkv[:, 0 * E:1 * E].astype(cdt)
    k = qkv[:, 1 * E:2 * E].astype(cdt)
    v = qkv[:, 2 * E:3 * E].astype(cdt)

    # --- multi-head self-attention, heads folded into a leading batch dim ----
    def split_heads(t):                      # (N, E) -> (H * Bt, S, Dh)
        heads = [t[:, h * Dh:(h + 1) * Dh] for h in range(H)]
        return jnp.concatenate(heads, axis=0).reshape(H * Bt, S, Dh)

    qh = split_heads(q)
    kh = split_heads(k)
    vh = split_heads(v)

    s = jnp.einsum("bqd,bkd->bqk", qh, kh,
                   preferred_element_type=jnp.float32) * scale
    s = s - jnp.max(s, axis=-1, keepdims=True)
    p = jnp.exp(s)
    p = p * pl.reciprocal(jnp.sum(p, axis=-1, keepdims=True), approx=True)

    ctx = jnp.einsum("bqk,bkd->bqd", p.astype(cdt), vh,
                     preferred_element_type=jnp.float32)       # (H*Bt, S, Dh)
    ctx = ctx.reshape(H, N, Dh)
    ctx = jnp.concatenate([ctx[h] for h in range(H)], axis=-1)  # (N, E)

    attn = jnp.dot(ctx.astype(cdt), wo_ref[...],
                   preferred_element_type=jnp.float32)
    attn = attn + bo_ref[...].astype(jnp.float32)

    # residual + LayerNorm 1 (post-norm, PyTorch default norm_first=False)
    x1 = _layernorm(x + attn,
                    ln1g_ref[...].astype(jnp.float32),
                    ln1b_ref[...].astype(jnp.float32))

    # --- feed-forward ---------------------------------------------------------
    hdn = jnp.dot(x1.astype(cdt), w1_ref[...],
                  preferred_element_type=jnp.float32)
    hdn = jnp.maximum(hdn + b1_ref[...].astype(jnp.float32), 0.0)   # relu
    ff = jnp.dot(hdn.astype(cdt), w2_ref[...],
                 preferred_element_type=jnp.float32)
    ff = ff + b2_ref[...].astype(jnp.float32)

    # residual + LayerNorm 2
    x2 = _layernorm(x1 + ff,
                    ln2g_ref[...].astype(jnp.float32),
                    ln2b_ref[...].astype(jnp.float32))

    o_ref[...] = x2.reshape(Bt, S, E).astype(o_ref.dtype)


def _choose_block_b(B, S, target_rows=256):
    """Batch-block size: fill the MXU M dim, keep >= 2 grid steps, divide B."""
    bt = max(1, (target_rows + S - 1) // max(S, 1))
    bt = min(bt, B)
    if B >= 2:
        bt = min(bt, B // 2)   # leave >= 2 parallel grid steps for v7x megacore
    bt = max(bt, 1)
    while B % bt:
        bt -= 1
    return bt


def positional_transformer_encoder(x, params, *, compute_dtype=jnp.float32,
                                   block_b=None):
    """x: (B, S, E) float32; params: dict of weights (see init_params)."""
    B, S, E = x.shape
    H = params["num_heads"]
    F = params["w1_T"].shape[1]
    assert E % H == 0, "embed_size must be divisible by num_heads"

    Bt = block_b if block_b is not None else _choose_block_b(B, S)
    assert B % Bt == 0

    pe = params["pe"][:S].astype(jnp.float32)

    # Fused QKV weight/bias (one wide MXU pass); matmul weights in compute dtype.
    wqkv = jnp.concatenate([params["wq_T"], params["wk_T"], params["wv_T"]],
                           axis=1).astype(compute_dtype)
    bqkv = jnp.concatenate([params["bq"], params["bk"], params["bv"]], axis=1)
    wo = params["wo_T"].astype(compute_dtype)
    w1 = params["w1_T"].astype(compute_dtype)
    w2 = params["w2_T"].astype(compute_dtype)

    kernel = functools.partial(_encoder_kernel, Bt, S, E, H)

    def full(shape):
        return pl.BlockSpec(shape, lambda b: (0,) * len(shape))

    in_specs = [
        pl.BlockSpec((Bt, S, E), lambda b: (b, 0, 0)),   # x block (Bt batch rows)
        full((S, E)),                                    # positional encoding
        full((E, 3 * E)), full((1, 3 * E)),              # fused QKV weight / bias
        full((E, E)), full((1, E)),                      # output projection
        full((1, E)), full((1, E)),                      # LN1 gamma, beta
        full((E, F)), full((1, F)),                      # FFN in
        full((F, E)), full((1, E)),                      # FFN out
        full((1, E)), full((1, E)),                      # LN2 gamma, beta
    ]

    # Rough VMEM footprint (double-buffered blocks + live intermediates); only
    # raise the scoped limit when the default would be tight.
    wbytes = jnp.dtype(compute_dtype).itemsize
    est = (2 * 2 * Bt * S * E * 4                                  # x / out blocks
           + 2 * S * E * 4                                         # pe
           + 2 * (4 * E * E + 2 * E * F) * wbytes                  # weights
           + 2 * (9 * E + F) * 4                                   # biases / LN params
           + (Bt * S * (4 * E + 4 * E + F) + 2 * H * Bt * S * S) * 4)  # intermediates
    est *= 2                                                       # safety margin
    cp_kwargs = dict(dimension_semantics=("parallel",))
    if est > 16 * 1024 * 1024:
        cp_kwargs["vmem_limit_bytes"] = int(min(64 * 1024 * 1024,
                                                max(32 * 1024 * 1024, est)))
    # TODO(synk): at production E/F on v7x, additionally single-buffer the
    # constant weight blocks (pipeline_mode=pl.Buffered(1) or manual copy).

    return pl.pallas_call(
        kernel,
        out_shape=jax.ShapeDtypeStruct((B, S, E), x.dtype),
        grid_spec=pltpu.PrefetchScalarGridSpec(
            num_scalar_prefetch=0,
            grid=(B // Bt,),
            in_specs=in_specs,
            out_specs=pl.BlockSpec((Bt, S, E), lambda b: (b, 0, 0)),
        ),
        compiler_params=pltpu.CompilerParams(**cp_kwargs),
    )(x, pe, wqkv, bqkv, wo, params["bo"],
      params["ln1_g"], params["ln1_b"],
      w1, params["b1"], w2, params["b2"],
      params["ln2_g"], params["ln2_b"])


def make_positional_encoding(max_len, d_model):
    position = jnp.arange(max_len, dtype=jnp.float32)[:, None]
    div_term = jnp.exp(jnp.arange(0, d_model, 2, dtype=jnp.float32)
                       * (-math.log(10000.0) / d_model))
    pe = jnp.zeros((max_len, d_model), dtype=jnp.float32)
    pe = pe.at[:, 0::2].set(jnp.sin(position * div_term))
    pe = pe.at[:, 1::2].set(jnp.cos(position * div_term))
    return pe


def init_params(key, max_seq_len, embed_size, num_heads, ffn_dim):
    E, F = embed_size, ffn_dim
    ks = jax.random.split(key, 8)
    std = 0.05
    return {
        "num_heads": num_heads,
        "pe": make_positional_encoding(max_seq_len, E),
        "wq_T": jax.random.normal(ks[0], (E, E), jnp.float32) * std,
        "wk_T": jax.random.normal(ks[1], (E, E), jnp.float32) * std,
        "wv_T": jax.random.normal(ks[2], (E, E), jnp.float32) * std,
        "bq": jax.random.normal(ks[3], (1, E), jnp.float32) * std,
        "bk": jnp.zeros((1, E), jnp.float32),
        "bv": jnp.zeros((1, E), jnp.float32),
        "wo_T": jax.random.normal(ks[4], (E, E), jnp.float32) * std,
        "bo": jnp.zeros((1, E), jnp.float32),
        "ln1_g": jnp.ones((1, E), jnp.float32),
        "ln1_b": jnp.zeros((1, E), jnp.float32),
        "w1_T": jax.random.normal(ks[5], (E, F), jnp.float32) * std,
        "b1": jax.random.normal(ks[6], (1, F), jnp.float32) * std,
        "w2_T": jax.random.normal(ks[7], (F, E), jnp.float32) * std,
        "b2": jnp.zeros((1, E), jnp.float32),
        "ln2_g": jnp.ones((1, E), jnp.float32),
        "ln2_b": jnp.zeros((1, E), jnp.float32),
    }


def reference_forward(x, params):
    """Pure-JAX reference (mirrors PyTorch TransformerEncoderLayer, post-norm, eval)."""
    B, S, E = x.shape
    H = params["num_heads"]
    Dh = E // H
    x = x + params["pe"][None, :S]
    q = x @ params["wq_T"] + params["bq"]
    k = x @ params["wk_T"] + params["bk"]
    v = x @ params["wv_T"] + params["bv"]
    qh = q.reshape(B, S, H, Dh)
    kh = k.reshape(B, S, H, Dh)
    vh = v.reshape(B, S, H, Dh)
    s = jnp.einsum("bqhd,bkhd->bhqk", qh, kh) / math.sqrt(Dh)
    p = jax.nn.softmax(s, axis=-1)
    ctx = jnp.einsum("bhqk,bkhd->bqhd", p, vh).reshape(B, S, E)
    attn = ctx @ params["wo_T"] + params["bo"]
    x1 = _layernorm(x + attn, params["ln1_g"], params["ln1_b"])
    ff = jnp.maximum(x1 @ params["w1_T"] + params["b1"], 0.0) @ params["w2_T"] + params["b2"]
    return _layernorm(x1 + ff, params["ln2_g"], params["ln2_b"])


if __name__ == "__main__":
    B, S, E, H, F = 4, 8, 32, 4, 64   # batch, seq, embed, heads, ffn hidden

    key = jax.random.PRNGKey(0)
    k_x, k_p = jax.random.split(key)
    x = jax.random.normal(k_x, (B, S, E), jnp.float32)
    params = init_params(k_p, max_seq_len=64, embed_size=E, num_heads=H, ffn_dim=F)

    ref = reference_forward(x, params)

    # f32 compute path
    out = positional_transformer_encoder(x, params, compute_dtype=jnp.float32)
    out = jax.block_until_ready(out)
    assert out.shape == (B, S, E)
    assert jnp.allclose(out, ref, atol=5e-2, rtol=5e-2), "f32 mismatch vs JAX reference"

    # bf16 weights / activations for MXU operands, f32 accumulation
    out_bf16 = positional_transformer_encoder(x, params, compute_dtype=jnp.bfloat16)
    out_bf16 = jax.block_until_ready(out_bf16)
    assert jnp.allclose(out_bf16, ref, atol=1.5e-1, rtol=1.5e-1), "bf16 mismatch vs reference"

    print("KERNEL_OK")
</pallas_src>

<mosaic_0001>
module attributes {stable_mosaic.version = 11 : i64} {
  func.func @_encoder_kernel(%arg0: i32, %arg1: memref<2x8x32xf32, #tpu.memory_space<vmem>>, %arg2: memref<8x32xf32, #tpu.memory_space<vmem>>, %arg3: memref<32x96xf32, #tpu.memory_space<vmem>>, %arg4: memref<1x96xf32, #tpu.memory_space<vmem>>, %arg5: memref<32x32xf32, #tpu.memory_space<vmem>>, %arg6: memref<1x32xf32, #tpu.memory_space<vmem>>, %arg7: memref<1x32xf32, #tpu.memory_space<vmem>>, %arg8: memref<1x32xf32, #tpu.memory_space<vmem>>, %arg9: memref<32x64xf32, #tpu.memory_space<vmem>>, %arg10: memref<1x64xf32, #tpu.memory_space<vmem>>, %arg11: memref<64x32xf32, #tpu.memory_space<vmem>>, %arg12: memref<1x32xf32, #tpu.memory_space<vmem>>, %arg13: memref<1x32xf32, #tpu.memory_space<vmem>>, %arg14: memref<1x32xf32, #tpu.memory_space<vmem>>, %arg15: memref<2x8x32xf32, #tpu.memory_space<vmem>>) attributes {dimension_semantics = [#tpu.dimension_semantics<parallel>], iteration_bounds = array<i64: 2>, scalar_prefetch = 0 : i64, scratch_operands = 0 : i64, tpu.core_type = #tpu.core_type<tc>, window_params = [{transform_indices = @transform_0, window_bounds = array<i64: 2, 8, 32>}, {pipeline_mode = #tpu.pipeline_mode<synchronous>, transform_indices = @transform_1, window_bounds = array<i64: 8, 32>}, {pipeline_mode = #tpu.pipeline_mode<synchronous>, transform_indices = @transform_2, window_bounds = array<i64: 32, 96>}, {pipeline_mode = #tpu.pipeline_mode<synchronous>, transform_indices = @transform_3, window_bounds = array<i64: 1, 96>}, {pipeline_mode = #tpu.pipeline_mode<synchronous>, transform_indices = @transform_4, window_bounds = array<i64: 32, 32>}, {pipeline_mode = #tpu.pipeline_mode<synchronous>, transform_indices = @transform_5, window_bounds = array<i64: 1, 32>}, {pipeline_mode = #tpu.pipeline_mode<synchronous>, transform_indices = @transform_6, window_bounds = array<i64: 1, 32>}, {pipeline_mode = #tpu.pipeline_mode<synchronous>, transform_indices = @transform_7, window_bounds = array<i64: 1, 32>}, {pipeline_mode = #tpu.pipeline_mode<synchronous>, transform_indices = @transform_8, window_bounds = array<i64: 32, 64>}, {pipeline_mode = #tpu.pipeline_mode<synchronous>, transform_indices = @transform_9, window_bounds = array<i64: 1, 64>}, {pipeline_mode = #tpu.pipeline_mode<synchronous>, transform_indices = @transform_10, window_bounds = array<i64: 64, 32>}, {pipeline_mode = #tpu.pipeline_mode<synchronous>, transform_indices = @transform_11, window_bounds = array<i64: 1, 32>}, {pipeline_mode = #tpu.pipeline_mode<synchronous>, transform_indices = @transform_12, window_bounds = array<i64: 1, 32>}, {pipeline_mode = #tpu.pipeline_mode<synchronous>, transform_indices = @transform_13, window_bounds = array<i64: 1, 32>}, {transform_indices = @transform_14, window_bounds = array<i64: 2, 8, 32>}]} {
    %c0 = arith.constant 0 : index
    %c0_0 = arith.constant 0 : index
    %c0_1 = arith.constant 0 : index
    %0 = vector.load %arg1[%c0, %c0_0, %c0_1] : memref<2x8x32xf32, #tpu.memory_space<vmem>>, vector<2x8x32xf32>
    %c0_2 = arith.constant 0 : index
    %c0_3 = arith.constant 0 : index
    %1 = vector.load %arg2[%c0_2, %c0_3] : memref<8x32xf32, #tpu.memory_space<vmem>>, vector<8x32xf32>
    %2 = vector.shape_cast %1 : vector<8x32xf32> to vector<1x8x32xf32>
    %3 = vector.broadcast %2 : vector<1x8x32xf32> to vector<2x8x32xf32>
    %4 = arith.addf %0, %3 : vector<2x8x32xf32>
    %5 = vector.shape_cast %4 : vector<2x8x32xf32> to vector<16x32xf32>
    %c0_4 = arith.constant 0 : index
    %c0_5 = arith.constant 0 : index
    %6 = vector.load %arg3[%c0_4, %c0_5] : memref<32x96xf32, #tpu.memory_space<vmem>>, vector<32x96xf32>
    %cst = arith.constant dense<0.000000e+00> : vector<16x96xf32>
    %7 = tpu.matmul %5, %6, %cst {dimension_numbers = #tpu.dot_dimension_numbers<[1], [0], [0], [1], [0, 0, 1, 1], [], []>} : vector<16x32xf32>, vector<32x96xf32>, vector<16x96xf32> -> vector<16x96xf32>
    %c0_6 = arith.constant 0 : index
    %c0_7 = arith.constant 0 : index
    %8 = vector.load %arg4[%c0_6, %c0_7] : memref<1x96xf32, #tpu.memory_space<vmem>>, vector<1x96xf32>
    %9 = vector.broadcast %8 : vector<1x96xf32> to vector<16x96xf32>
    %10 = arith.addf %7, %9 : vector<16x96xf32>
    %11 = vector.extract_strided_slice %10 {offsets = [0, 0], sizes = [16, 32], strides = [1, 1]} : vector<16x96xf32> to vector<16x32xf32>
    %12 = vector.extract_strided_slice %10 {offsets = [0, 32], sizes = [16, 32], strides = [1, 1]} : vector<16x96xf32> to vector<16x32xf32>
    %13 = vector.extract_strided_slice %10 {offsets = [0, 64], sizes = [16, 32], strides = [1, 1]} : vector<16x96xf32> to vector<16x32xf32>
    %14 = vector.extract_strided_slice %11 {offsets = [0, 0], sizes = [16, 8], strides = [1, 1]} : vector<16x32xf32> to vector<16x8xf32>
    %15 = vector.extract_strided_slice %11 {offsets = [0, 8], sizes = [16, 8], strides = [1, 1]} : vector<16x32xf32> to vector<16x8xf32>
    %16 = vector.extract_strided_slice %11 {offsets = [0, 16], sizes = [16, 8], strides = [1, 1]} : vector<16x32xf32> to vector<16x8xf32>
    %17 = vector.extract_strided_slice %11 {offsets = [0, 24], sizes = [16, 8], strides = [1, 1]} : vector<16x32xf32> to vector<16x8xf32>
    %18 = tpu.concatenate %14, %15, %16, %17 in 0 : vector<16x8xf32>, vector<16x8xf32>, vector<16x8xf32>, vector<16x8xf32> -> vector<64x8xf32>
    %19 = vector.shape_cast %18 : vector<64x8xf32> to vector<8x8x8xf32>
    %20 = vector.extract_strided_slice %12 {offsets = [0, 0], sizes = [16, 8], strides = [1, 1]} : vector<16x32xf32> to vector<16x8xf32>
    %21 = vector.extract_strided_slice %12 {offsets = [0, 8], sizes = [16, 8], strides = [1, 1]} : vector<16x32xf32> to vector<16x8xf32>
    %22 = vector.extract_strided_slice %12 {offsets = [0, 16], sizes = [16, 8], strides = [1, 1]} : vector<16x32xf32> to vector<16x8xf32>
    %23 = vector.extract_strided_slice %12 {offsets = [0, 24], sizes = [16, 8], strides = [1, 1]} : vector<16x32xf32> to vector<16x8xf32>
    %24 = tpu.concatenate %20, %21, %22, %23 in 0 : vector<16x8xf32>, vector<16x8xf32>, vector<16x8xf32>, vector<16x8xf32> -> vector<64x8xf32>
    %25 = vector.shape_cast %24 : vector<64x8xf32> to vector<8x8x8xf32>
    %26 = vector.extract_strided_slice %13 {offsets = [0, 0], sizes = [16, 8], strides = [1, 1]} : vector<16x32xf32> to vector<16x8xf32>
    %27 = vector.extract_strided_slice %13 {offsets = [0, 8], sizes = [16, 8], strides = [1, 1]} : vector<16x32xf32> to vector<16x8xf32>
    %28 = vector.extract_strided_slice %13 {offsets = [0, 16], sizes = [16, 8], strides = [1, 1]} : vector<16x32xf32> to vector<16x8xf32>
    %29 = vector.extract_strided_slice %13 {offsets = [0, 24], sizes = [16, 8], strides = [1, 1]} : vector<16x32xf32> to vector<16x8xf32>
    %30 = tpu.concatenate %26, %27, %28, %29 in 0 : vector<16x8xf32>, vector<16x8xf32>, vector<16x8xf32>, vector<16x8xf32> -> vector<64x8xf32>
    %31 = vector.shape_cast %30 : vector<64x8xf32> to vector<8x8x8xf32>
    "tpu.trace_start"() <{level = 10 : i32, message = "bqd,bkd->bqk"}> : () -> ()
    %cst_8 = arith.constant dense<0.000000e+00> : vector<8x8x8xf32>
    %32 = tpu.matmul %19, %25, %cst_8 {dimension_numbers = #tpu.dot_dimension_numbers<[2], [2], [1], [1], [0, 0, 0, 1, 1, 1], [0], [0]>} : vector<8x8x8xf32>, vector<8x8x8xf32>, vector<8x8x8xf32> -> vector<8x8x8xf32>
    "tpu.trace_stop"() : () -> ()
    %cst_9 = arith.constant 0.353553385 : f32
    %33 = vector.broadcast %cst_9 : f32 to vector<8x8x8xf32>
    %34 = arith.mulf %32, %33 : vector<8x8x8xf32>
    %cst_10 = arith.constant dense<0xFF800000> : vector<8x8xf32>
    %35 = vector.multi_reduction <maximumf>, %34, %cst_10 [2] : vector<8x8x8xf32> to vector<8x8xf32>
    %36 = vector.shape_cast %35 : vector<8x8xf32> to vector<8x8x1xf32>
    %37 = vector.broadcast %36 : vector<8x8x1xf32> to vector<8x8x8xf32>
    %38 = arith.subf %34, %37 : vector<8x8x8xf32>
    %39 = math.exp %38 : vector<8x8x8xf32>
    %cst_11 = arith.constant dense<0.000000e+00> : vector<8x8xf32>
    %40 = vector.multi_reduction <add>, %39, %cst_11 [2] : vector<8x8x8xf32> to vector<8x8xf32>
    %41 = vector.shape_cast %40 : vector<8x8xf32> to vector<8x8x1xf32>
    %42 = tpu.reciprocal %41 {approx = true} : vector<8x8x1xf32> -> vector<8x8x1xf32>
    %43 = vector.broadcast %42 : vector<8x8x1xf32> to vector<8x8x8xf32>
    %44 = arith.mulf %39, %43 : vector<8x8x8xf32>
    "tpu.trace_start"() <{level = 10 : i32, message = "bqk,bkd->bqd"}> : () -> ()
    %cst_12 = arith.constant dense<0.000000e+00> : vector<8x8x8xf32>
    %45 = tpu.matmul %44, %31, %cst_12 {dimension_numbers = #tpu.dot_dimension_numbers<[2], [1], [1], [2], [0, 0, 0, 1, 1, 2], [0], [0]>} : vector<8x8x8xf32>, vector<8x8x8xf32>, vector<8x8x8xf32> -> vector<8x8x8xf32>
    "tpu.trace_stop"() : () -> ()
    %46 = vector.shape_cast %45 : vector<8x8x8xf32> to vector<4x16x8xf32>
    %47 = vector.extract_strided_slice %46 {offsets = [0, 0, 0], sizes = [1, 16, 8], strides = [1, 1, 1]} : vector<4x16x8xf32> to vector<1x16x8xf32>
    %48 = vector.shape_cast %47 : vector<1x16x8xf32> to vector<16x8xf32>
    %49 = vector.extract_strided_slice %46 {offsets = [1, 0, 0], sizes = [1, 16, 8], strides = [1, 1, 1]} : vector<4x16x8xf32> to vector<1x16x8xf32>
    %50 = vector.shape_cast %49 : vector<1x16x8xf32> to vector<16x8xf32>
    %51 = vector.extract_strided_slice %46 {offsets = [2, 0, 0], sizes = [1, 16, 8], strides = [1, 1, 1]} : vector<4x16x8xf32> to vector<1x16x8xf32>
    %52 = vector.shape_cast %51 : vector<1x16x8xf32> to vector<16x8xf32>
    %53 = vector.extract_strided_slice %46 {offsets = [3, 0, 0], sizes = [1, 16, 8], strides = [1, 1, 1]} : vector<4x16x8xf32> to vector<1x16x8xf32>
    %54 = vector.shape_cast %53 : vector<1x16x8xf32> to vector<16x8xf32>
    %55 = tpu.concatenate %48, %50, %52, %54 in 1 : vector<16x8xf32>, vector<16x8xf32>, vector<16x8xf32>, vector<16x8xf32> -> vector<16x32xf32>
    %c0_13 = arith.constant 0 : index
    %c0_14 = arith.constant 0 : index
    %56 = vector.load %arg5[%c0_13, %c0_14] : memref<32x32xf32, #tpu.memory_space<vmem>>, vector<32x32xf32>
    %cst_15 = arith.constant dense<0.000000e+00> : vector<16x32xf32>
    %57 = tpu.matmul %55, %56, %cst_15 {dimension_numbers = #tpu.dot_dimension_numbers<[1], [0], [0], [1], [0, 0, 1, 1], [], []>} : vector<16x32xf32>, vector<32x32xf32>, vector<16x32xf32> -> vector<16x32xf32>
    %c0_16 = arith.constant 0 : index
    %c0_17 = arith.constant 0 : index
    %58 = vector.load %arg6[%c0_16, %c0_17] : memref<1x32xf32, #tpu.memory_space<vmem>>, vector<1x32xf32>
    %59 = vector.broadcast %58 : vector<1x32xf32> to vector<16x32xf32>
    %60 = arith.addf %57, %59 : vector<16x32xf32>
    %61 = arith.addf %5, %60 : vector<16x32xf32>
    %c0_18 = arith.constant 0 : index
    %c0_19 = arith.constant 0 : index
    %62 = vector.load %arg7[%c0_18, %c0_19] : memref<1x32xf32, #tpu.memory_space<vmem>>, vector<1x32xf32>
    %c0_20 = arith.constant 0 : index
    %c0_21 = arith.constant 0 : index
    %63 = vector.load %arg8[%c0_20, %c0_21] : memref<1x32xf32, #tpu.memory_space<vmem>>, vector<1x32xf32>
    %cst_22 = arith.constant dense<0.000000e+00> : vector<16xf32>
    %64 = vector.multi_reduction <add>, %61, %cst_22 [1] : vector<16x32xf32> to vector<16xf32>
    %65 = vector.shape_cast %64 : vector<16xf32> to vector<16x1xf32>
    %cst_23 = arith.constant 3.200000e+01 : f32
    %66 = vector.broadcast %cst_23 : f32 to vector<16x1xf32>
    %67 = arith.divf %65, %66 : vector<16x1xf32>
    %68 = vector.broadcast %67 : vector<16x1xf32> to vector<16x32xf32>
    %69 = arith.subf %61, %68 : vector<16x32xf32>
    %70 = arith.mulf %69, %69 : vector<16x32xf32>
    %cst_24 = arith.constant dense<0.000000e+00> : vector<16xf32>
    %71 = vector.multi_reduction <add>, %70, %cst_24 [1] : vector<16x32xf32> to vector<16xf32>
    %72 = vector.shape_cast %71 : vector<16xf32> to vector<16x1xf32>
    %cst_25 = arith.constant 3.200000e+01 : f32
    %73 = vector.broadcast %cst_25 : f32 to vector<16x1xf32>
    %74 = arith.divf %72, %73 : vector<16x1xf32>
    %75 = vector.broadcast %67 : vector<16x1xf32> to vector<16x32xf32>
    %76 = arith.subf %61, %75 : vector<16x32xf32>
    %cst_26 = arith.constant 9.99999974E-6 : f32
    %77 = vector.broadcast %cst_26 : f32 to vector<16x1xf32>
    %78 = arith.addf %74, %77 : vector<16x1xf32>
    %79 = math.rsqrt %78 : vector<16x1xf32>
    %80 = vector.broadcast %79 : vector<16x1xf32> to vector<16x32xf32>
    %81 = arith.mulf %76, %80 : vector<16x32xf32>
    %82 = vector.broadcast %62 : vector<1x32xf32> to vector<16x32xf32>
    %83 = arith.mulf %81, %82 : vector<16x32xf32>
    %84 = vector.broadcast %63 : vector<1x32xf32> to vector<16x32xf32>
    %85 = arith.addf %83, %84 : vector<16x32xf32>
    %c0_27 = arith.constant 0 : index
    %c0_28 = arith.constant 0 : index
    %86 = vector.load %arg9[%c0_27, %c0_28] : memref<32x64xf32, #tpu.memory_space<vmem>>, vector<32x64xf32>
    %cst_29 = arith.constant dense<0.000000e+00> : vector<16x64xf32>
    %87 = tpu.matmul %85, %86, %cst_29 {dimension_numbers = #tpu.dot_dimension_numbers<[1], [0], [0], [1], [0, 0, 1, 1], [], []>} : vector<16x32xf32>, vector<32x64xf32>, vector<16x64xf32> -> vector<16x64xf32>
    %c0_30 = arith.constant 0 : index
    %c0_31 = arith.constant 0 : index
    %88 = vector.load %arg10[%c0_30, %c0_31] : memref<1x64xf32, #tpu.memory_space<vmem>>, vector<1x64xf32>
    %89 = vector.broadcast %88 : vector<1x64xf32> to vector<16x64xf32>
    %90 = arith.addf %87, %89 : vector<16x64xf32>
    %cst_32 = arith.constant 0.000000e+00 : f32
    %91 = vector.broadcast %cst_32 : f32 to vector<16x64xf32>
    %92 = arith.maximumf %90, %91 : vector<16x64xf32>
    %c0_33 = arith.constant 0 : index
    %c0_34 = arith.constant 0 : index
    %93 = vector.load %arg11[%c0_33, %c0_34] : memref<64x32xf32, #tpu.memory_space<vmem>>, vector<64x32xf32>
    %cst_35 = arith.constant dense<0.000000e+00> : vector<16x32xf32>
    %94 = tpu.matmul %92, %93, %cst_35 {dimension_numbers = #tpu.dot_dimension_numbers<[1], [0], [0], [1], [0, 0, 1, 1], [], []>} : vector<16x64xf32>, vector<64x32xf32>, vector<16x32xf32> -> vector<16x32xf32>
    %c0_36 = arith.constant 0 : index
    %c0_37 = arith.constant 0 : index
    %95 = vector.load %arg12[%c0_36, %c0_37] : memref<1x32xf32, #tpu.memory_space<vmem>>, vector<1x32xf32>
    %96 = vector.broadcast %95 : vector<1x32xf32> to vector<16x32xf32>
    %97 = arith.addf %94, %96 : vector<16x32xf32>
    %98 = arith.addf %85, %97 : vector<16x32xf32>
    %c0_38 = arith.constant 0 : index
    %c0_39 = arith.constant 0 : index
    %99 = vector.load %arg13[%c0_38, %c0_39] : memref<1x32xf32, #tpu.memory_space<vmem>>, vector<1x32xf32>
    %c0_40 = arith.constant 0 : index
    %c0_41 = arith.constant 0 : index
    %100 = vector.load %arg14[%c0_40, %c0_41] : memref<1x32xf32, #tpu.memory_space<vmem>>, vector<1x32xf32>
    %cst_42 = arith.constant dense<0.000000e+00> : vector<16xf32>
    %101 = vector.multi_reduction <add>, %98, %cst_42 [1] : vector<16x32xf32> to vector<16xf32>
    %102 = vector.shape_cast %101 : vector<16xf32> to vector<16x1xf32>
    %cst_43 = arith.constant 3.200000e+01 : f32
    %103 = vector.broadcast %cst_43 : f32 to vector<16x1xf32>
    %104 = arith.divf %102, %103 : vector<16x1xf32>
    %105 = vector.broadcast %104 : vector<16x1xf32> to vector<16x32xf32>
    %106 = arith.subf %98, %105 : vector<16x32xf32>
    %107 = arith.mulf %106, %106 : vector<16x32xf32>
    %cst_44 = arith.constant dense<0.000000e+00> : vector<16xf32>
    %108 = vector.multi_reduction <add>, %107, %cst_44 [1] : vector<16x32xf32> to vector<16xf32>
    %109 = vector.shape_cast %108 : vector<16xf32> to vector<16x1xf32>
    %cst_45 = arith.constant 3.200000e+01 : f32
    %110 = vector.broadcast %cst_45 : f32 to vector<16x1xf32>
    %111 = arith.divf %109, %110 : vector<16x1xf32>
    %112 = vector.broadcast %104 : vector<16x1xf32> to vector<16x32xf32>
    %113 = arith.subf %98, %112 : vector<16x32xf32>
    %cst_46 = arith.constant 9.99999974E-6 : f32
    %114 = vector.broadcast %cst_46 : f32 to vector<16x1xf32>
    %115 = arith.addf %111, %114 : vector<16x1xf32>
    %116 = math.rsqrt %115 : vector<16x1xf32>
    %117 = vector.broadcast %116 : vector<16x1xf32> to vector<16x32xf32>
    %118 = arith.mulf %113, %117 : vector<16x32xf32>
    %119 = vector.broadcast %99 : vector<1x32xf32> to vector<16x32xf32>
    %120 = arith.mulf %118, %119 : vector<16x32xf32>
    %121 = vector.broadcast %100 : vector<1x32xf32> to vector<16x32xf32>
    %122 = arith.addf %120, %121 : vector<16x32xf32>
    %123 = vector.shape_cast %122 : vector<16x32xf32> to vector<2x8x32xf32>
    %c0_47 = arith.constant 0 : index
    %c0_48 = arith.constant 0 : index
    %c0_49 = arith.constant 0 : index
    %124 = vector.load %arg15[%c0_47, %c0_48, %c0_49] : memref<2x8x32xf32, #tpu.memory_space<vmem>>, vector<2x8x32xf32>
    tpu.vector_store %arg15[%c0_47, %c0_48, %c0_49], %123 {strides = array<i32>} : memref<2x8x32xf32, #tpu.memory_space<vmem>>, vector<2x8x32xf32>,
    return
  }
  func.func @transform_0(%arg0: i32) -> (i32, i32, i32) {
    %c0_i32 = arith.constant 0 : i32
    %c0_i32_0 = arith.constant 0 : i32
    %c0_i32_1 = arith.constant 0 : i32
    return %arg0, %c0_i32, %c0_i32_0 : i32, i32, i32
  }
  func.func @transform_1(%arg0: i32) -> (i32, i32) {
    %c0_i32 = arith.constant 0 : i32
    %c0_i32_0 = arith.constant 0 : i32
    %c0_i32_1 = arith.constant 0 : i32
    return %c0_i32, %c0_i32_0 : i32, i32
  }
  func.func @transform_2(%arg0: i32) -> (i32, i32) {
    %c0_i32 = arith.constant 0 : i32
    %c0_i32_0 = arith.constant 0 : i32
    %c0_i32_1 = arith.constant 0 : i32
    return %c0_i32, %c0_i32_0 : i32, i32
  }
  func.func @transform_3(%arg0: i32) -> (i32, i32) {
    %c0_i32 = arith.constant 0 : i32
    %c0_i32_0 = arith.constant 0 : i32
    %c0_i32_1 = arith.constant 0 : i32
    return %c0_i32, %c0_i32_0 : i32, i32
  }
  func.func @transform_4(%arg0: i32) -> (i32, i32) {
    %c0_i32 = arith.constant 0 : i32
    %c0_i32_0 = arith.constant 0 : i32
    %c0_i32_1 = arith.constant 0 : i32
    return %c0_i32, %c0_i32_0 : i32, i32
  }
  func.func @transform_5(%arg0: i32) -> (i32, i32) {
    %c0_i32 = arith.constant 0 : i32
    %c0_i32_0 = arith.constant 0 : i32
    %c0_i32_1 = arith.constant 0 : i32
    return %c0_i32, %c0_i32_0 : i32, i32
  }
  func.func @transform_6(%arg0: i32) -> (i32, i32) {
    %c0_i32 = arith.constant 0 : i32
    %c0_i32_0 = arith.constant 0 : i32
    %c0_i32_1 = arith.constant 0 : i32
    return %c0_i32, %c0_i32_0 : i32, i32
  }
  func.func @transform_7(%arg0: i32) -> (i32, i32) {
    %c0_i32 = arith.constant 0 : i32
    %c0_i32_0 = arith.constant 0 : i32
    %c0_i32_1 = arith.constant 0 : i32
    return %c0_i32, %c0_i32_0 : i32, i32
  }
  func.func @transform_8(%arg0: i32) -> (i32, i32) {
    %c0_i32 = arith.constant 0 : i32
    %c0_i32_0 = arith.constant 0 : i32
    %c0_i32_1 = arith.constant 0 : i32
    return %c0_i32, %c0_i32_0 : i32, i32
  }
  func.func @transform_9(%arg0: i32) -> (i32, i32) {
    %c0_i32 = arith.constant 0 : i32
    %c0_i32_0 = arith.constant 0 : i32
    %c0_i32_1 = arith.constant 0 : i32
    return %c0_i32, %c0_i32_0 : i32, i32
  }
  func.func @transform_10(%arg0: i32) -> (i32, i32) {
    %c0_i32 = arith.constant 0 : i32
    %c0_i32_0 = arith.constant 0 : i32
    %c0_i32_1 = arith.constant 0 : i32
    return %c0_i32, %c0_i32_0 : i32, i32
  }
  func.func @transform_11(%arg0: i32) -> (i32, i32) {
    %c0_i32 = arith.constant 0 : i32
    %c0_i32_0 = arith.constant 0 : i32
    %c0_i32_1 = arith.constant 0 : i32
    return %c0_i32, %c0_i32_0 : i32, i32
  }
  func.func @transform_12(%arg0: i32) -> (i32, i32) {
    %c0_i32 = arith.constant 0 : i32
    %c0_i32_0 = arith.constant 0 : i32
    %c0_i32_1 = arith.constant 0 : i32
    return %c0_i32, %c0_i32_0 : i32, i32
  }
  func.func @transform_13(%arg0: i32) -> (i32, i32) {
    %c0_i32 = arith.constant 0 : i32
    %c0_i32_0 = arith.constant 0 : i32
    %c0_i32_1 = arith.constant 0 : i32
    return %c0_i32, %c0_i32_0 : i32, i32
  }
  func.func @transform_14(%arg0: i32) -> (i32, i32, i32) {
    %c0_i32 = arith.constant 0 : i32
    %c0_i32_0 = arith.constant 0 : i32
    %c0_i32_1 = arith.constant 0 : i32
    return %arg0, %c0_i32, %c0_i32_0 : i32, i32, i32
  }
}

</mosaic_0001>

<bundles_post_ra>
// kernel: tpu_custom_call.1
= control target key start
LH: loop header
LB: loop body
LE: loop exit
PB: predicated region body
PF: predicated region fallthrough
CT: control target
= control target key end

     0   :  { %19 = vsyncpa [#allocation3], 0  ;;  %s3480_s0 = inlined_call_operand.vmem [shape: f32[4,8,32], index: 0, kind: input, shape index: {}]   ;;  %s3481_s1 = inlined_call_operand.hbm [shape: f32[8,32], index: 1, kind: input, shape index: {}]   ;;  %s3482_s2 = inlined_call_operand.vmem [shape: f32[32,96], index: 2, kind: input, shape index: {}]   ;;  %s3483_s3 = inlined_call_operand.vmem [shape: f32[1,96], index: 3, kind: input, shape index: {}]   ;;  %s3484_s4 = inlined_call_operand.vmem [shape: f32[32,32], index: 4, kind: input, shape index: {}]   ;;  %s3485_s5 = inlined_call_operand.vmem [shape: f32[1,32], index: 5, kind: input, shape index: {}]   ;;  %s3486_s6 = inlined_call_operand.vmem [shape: f32[1,32], index: 6, kind: input, shape index: {}]   ;;  %s3487_s7 = inlined_call_operand.vmem [shape: f32[1,32], index: 7, kind: input, shape index: {}]   ;;  %s3488_s8 = inlined_call_operand.hbm [shape: f32[32,64], index: 8, kind: input, shape index: {}]   ;;  %s3489_s9 = inlined_call_operand.vmem [shape: f32[1,64], index: 9, kind: input, shape index: {}]   ;;  %s3490_s10 = inlined_call_operand.vmem [shape: f32[64,32], index: 10, kind: input, shape index: {}]   ;;  %s3491_s11 = inlined_call_operand.vmem [shape: f32[1,32], index: 11, kind: input, shape index: {}]   ;;  %s3492_s12 = inlined_call_operand.vmem [shape: f32[1,32], index: 12, kind: input, shape index: {}]   ;;  %s3493_s13 = inlined_call_operand.vmem [shape: f32[1,32], index: 13, kind: input, shape index: {}]   ;;  %s3494_s14 = inlined_call_operand.hbm [shape: f32[4,8,32], index: 14, kind: output, shape index: {}]  }
   0x1   :  { %20 = vsyncpa [#allocation6], 0 }
   0x2   :  { %21 = vsyncpa [#allocation4], 0 }
   0x3   :  { %23 = vsyncpa [#allocation4 + $0x1], 0  ;;  %s3051_s29 = smov 0   ;;  %s3053_s30 = smov 0  }
   0x4   :  { %s3055_s15 = smov 0   ;;  %s3057_s16 = smov 0  }
   0x5 LB: > { %3504 = sst [smem:[#allocation11_spill]] %s2946_s29  ;;  %s3072_s17 = sadd.s32 4294967295, %s2958_s16   ;;  %s2958_s16 = sphi %s3057_s16, %s3524_s16   ;;  %s2954_s15 = sphi %s3055_s15, %s3526_s15   ;;  %s2950_s30 = sphi %s3053_s30, %s3528_s30   ;;  %s2946_s29 = sphi %s3051_s29, %s3527_s29  }
   0x6   : > { %3505 = sst [smem:[#allocation12_spill]] %s2954_s15  ;;  %s2430_s18 = sadd.s32 4294967294, %s2958_s16  }
   0x7   : > { %3506 = sst [smem:[#allocation13_spill]] %s2958_s16  ;;  %s3076_s19 = sadd.s32 1, %s2958_s16  }
   0x8   : > { %3507 = sst [smem:[#allocation14_spill]] %s3076_s19  ;;  %s335_s20 = sadd.s32 1, %s2954_s15 }
   0x9   : > { %s332_s21 = ssub.s32 %s2958_s16, %s3076_s19  ;;  %p345_p0 = scmp.ne.s32.totalorder %s2954_s15, %s2950_s30 }
   0xa   : > { %p333_p1 = scmp.eq.s32.totalorder %s332_s21, 0  ;;  %p346_p2 = scmp.eq.s32.totalorder %s3072_s17, 1 }
   0xb   : > { %p351_p3 = scmp.ne.s32.totalorder %s2950_s30, %s2946_s29  ;;  %p352_p4 = scmp.eq.s32.totalorder %s2430_s18, 1 }
   0xc   : > { %s3087_s22 = scalar_select %p333_p1, %s2954_s15, %s335_s20  }
   0xd   : > { %p3089_p5 = por %p346_p2, %p345_p0  ;;  %p3093_p6 = por %p352_p4, %p351_p3 }
   0xe   : > { %3508 = sst [smem:[#allocation15_spill]] %s3087_s22  ;;  %p2431_p7 = scmp.ge.s32.totalorder %s2958_s16, 1 }
   0xf   : > { %s3509_s23 = scalar_select %p3089_p5, 1, 0 }
  0x10   : > { %s3510_s24 = scalar_select %p3093_p6, 1, 0 }
  0x11   : > { %p359_p8 = scmp.lt.s32.totalorder %s2958_s16, 3  ;;  %p3500_p9 = scmp.eq.s32.totalorder %s3072_s17, 0 }
  0x12   : > { %3511 = sst [smem:[#allocation16_spill]] %s3510_s24  ;;  %s2960_s26 = smov [#allocation2]  }
  0x13   : > { %p3100_p10 = pnand %p2431_p7, %p359_p8  ;;  %s372_s27 = sshll.u32 %s2960_s26, 4  ;;  %s373_s27 = int_to_ptr.vmem [resolvable:$true] %s372_s27 }
  0x14   : > { %s2961_s28 = smov [#allocation5]   ;;  %s2832_s15 = scalar_lea.hbm %s3481_s1, 128 }
  0x15   : > { %s3512_s25 = scalar_select %p3100_p10, 1, 0 }
  0x16   : > { %p2729_p11 = pneg %p3100_p10  ;;  %s400_s18 = sshll.u32 %s2961_s28, 4  ;;  %s3112_s18 = int_to_ptr.vmem [resolvable:$true] %s400_s18 }
  0x17   : > { %p2833_p13 = scmp.ne.s32.totalorder %s3481_s1, %s2832_s15  ;;  %p2839_p3 = scmp.lt.u32.totalorder %s2832_s15, %s3481_s1 }
  0x18   : > { %p3108_p12 = pnand %p3500_p9, %p2729_p11 }
  0x1a   : > { %p2834_p0 = pneg %p3108_p12 }
  0x1c   : > { %p2835_p1 = pnand %p2834_p0, %p2833_p13 }
  0x1e   : > { %p2836_p2 = pneg %p2835_p1 }
  0x20   : > { %p2841_p4 = pnand %p2839_p3, %p2836_p2 }
  0x22   : > { %2844 = shalt.err (!%p2841_p4)
}
  0x23   : > { %s2845_s29 = scalar_lea.vmem %s373_s27, 128  ;;  %p2853_p9 = scmp.lt.s32.totalorder %s373_s27, %s373_s27 }
  0x24   : > { %p2846_p7 = scmp.ne.s32.totalorder %s373_s27, %s2845_s29  ;;  %p2854_p6 = scmp.lt.s32.totalorder %s2845_s29, %s2845_s29 }
  0x26   : > { %p2848_p8 = pnand %p2846_p7, %p2834_p0  ;;  %p2855_p5 = por %p2854_p6, %p2853_p9 }
  0x28   : > { %p2849_p11 = pneg %p2848_p8 }
  0x2a   : > { %p2856_p10 = pnand %p2855_p5, %p2849_p11 }
  0x2c   : > { %2859 = shalt.err (!%p2856_p10)
}
  0x2d   : > { %2732 = dma.hbm_to_vmem [thread:$0]  (!%p3108_p12), %s3481_s1, 128, %s373_s27, [#allocation3]  }
  0x2e   : > { %s2860_s21 = scalar_lea.hbm %s3488_s8, 512 }
  0x2f   : > { %p2861_p13 = scmp.ne.s32.totalorder %s3488_s8, %s2860_s21  ;;  %p2867_p9 = scmp.lt.u32.totalorder %s2860_s21, %s3488_s8 }
  0x31   : > { %p2863_p6 = pnand %p2861_p13, %p2834_p0 }
  0x33   : > { %p2864_p5 = pneg %p2863_p6 }
  0x35   : > { %p2869_p10 = pnand %p2867_p9, %p2864_p5 }
  0x37   : > { %2872 = shalt.err (!%p2869_p10)
}
  0x38   : > { %s2873_s27 = scalar_lea.vmem %s3112_s18, 512  ;;  %p2881_p4 = scmp.lt.s32.totalorder %s3112_s18, %s3112_s18 }
  0x39   : > { %p2874_p1 = scmp.ne.s32.totalorder %s3112_s18, %s2873_s27  ;;  %p2882_p7 = scmp.lt.s32.totalorder %s2873_s27, %s2873_s27 }
  0x3b   : > { %p2876_p2 = pnand %p2874_p1, %p2834_p0  ;;  %p2883_p8 = por %p2882_p7, %p2881_p4 }
  0x3d   : > { %p2877_p3 = pneg %p2876_p2 }
  0x3f   : > { %p2884_p11 = pnand %p2883_p8, %p2877_p3 }
  0x41   : > { %2887 = shalt.err (!%p2884_p11)
}
  0x42   : > { %s2962_s16 = smov 128   ;;  %s2963_s19 = smov 8  }
  0x43   : > { %2735 = dma.hbm_to_vmem [thread:$0]  (!%p3108_p12), %s3488_s8, 512, %s3112_s18, [#allocation6], %s2962_s16, %s2962_s16, %s2963_s19  }
  0x44   : > { %p3514_p13 = scmp.ne.s32.totalorder %s3512_s25, 0 }
  0x45   : > { %p3515_p0 = scmp.eq.s32.totalorder (!%p3514_p13), %s3072_s17, 0 }
  0x46   : > { %440 = sbr.rel (%p3514_p13) target bundleno = 2706 (0xa92), region = 76 }
  0x4d   : > { %2933 = dma.done.wait (%p3515_p0), [#allocation3], 128   ;;  %p3516_p6 = pmov %p3515_p0 }
  0x4e   : > { %p3517_p5 = pmov %p3515_p0 }
  0x4f   : > { %2935 = vsyncadd (%p3516_p6), [#allocation3], 4294967168 }
  0x50   : > { %2937 = dma.done.wait (%p3517_p5), [#allocation6], 512   ;;  %p3518_p9 = pmov %p3515_p0 }
  0x51   : > { %s2439_s20 = sshll.u32 %s3072_s17, 1  ;;  %v502_v0 = vld [vmem:[%s3482_s2] sm:$0xff]  ;;  %v503_v1 = vld [vmem:[%s3482_s2 + $0x8] sm:$0xff]  ;;  %v504_v2 = vld [vmem:[%s3482_s2 + $0x10] sm:$0xff]  ;;  %vm513_vm0 = vcmask 261120   ;;  %v2964_v13 = vmov 0.0  }
  0x52   : > { %2939 = vsyncadd (%p3518_p9), [#allocation6], 4294966784  ;;  %p491_p10 = scmp.lt.s32.totalorder %s2439_s20, 3  ;;  %v2679_v3 = vpack.c.bf16 %v503_v1, %v502_v0  ;;  %v505_v4 = vld [vmem:[%s3482_s2 + $0x18] sm:$0xff]  ;;  %v499_v7 = vld [vmem:[#allocation2] sm:$0xff]  ;;  %2568 = vmatprep.subr.mxu0 %v2964_v13  ;;  %s2965_s24 = smov 112  }
  0x53   : > { %v2683_v6 = vpack.c.bf16 %v505_v4, %v504_v2  ;;  %v2441_v11 = vld [vmem:[%s3483_s3] ss:$0 sm:$0xff]  ;;  %s2966_s25 = smov 120   ;;  %vm2967_vm1 = vmmov 0   ;;  %s2969_s26 = smov 96   ;;  %vm611_vm2 = vcmask 64512  }
  0x54   : > { %s3530_s20 = smov (!%p491_p10, %s2439_s20), 3  ;;  %2680 = vmatprep.subr.bf16.mxu1 %v2679_v3  ;;  %2570 = vmatprep.mubr.msk.f32.mxu0 %vm2967_vm1, %v2964_v13  ;;  %s2970_s28 = smov 64   ;;  %vm1948_vm3 = vcmask 130048   ;;  %vm1951_vm4 = vcmask 195584   ;;  %vm2202_vm5 = vcmask 523264  }
  0x55   : > { %s2440_s18 = sshll.u32 %s3530_s20, 3  ;;  %2682 = vmatpush3.bf16.msra.mxu1 %v2679_v3  ;;  %s487_s29 = sand.u32 1, %s2950_s30  }
  0x56   : > { %s494_s21 = scalar_lea.vmem %s3480_s0, %s2440_s18  ;;  %2684 = vmatprep.subr.bf16.mxu1 %v2683_v6  ;;  %s2438_s27 = sshll.u32 %s487_s29, 4 }
  0x57   : > { %v497_v5 = vld [vmem:[%s494_s21] sm:$0xff]  ;;  %v498_v9 = vld [vmem:[%s494_s21 + $0x8] sm:$0xff]  ;;  %s2968_s21 = smov 104   ;;  %s2486_s20 = sshll.u32 %s3072_s17, 8 }
  0x58   : > { %v3187_v8 = vadd.f32 %v499_v7, %v497_v5  ;;  %v3191_v10 = vadd.f32 %v499_v7, %v498_v9  ;;  %s489_s18 = scalar_lea.vmem [#allocation7], %s2438_s27  ;;  %s3438_s17 = scalar_lea.sflag [#allocation4], %s487_s29 }
  0x59   : > { %2686 = vmatpush3.bf16.msra.mxu1 %v2683_v6  ;;  %p3519_p1 = scmp.ne.s32.totalorder %s3509_s23, 0  ;;  %s2974_s16 = smov [#allocation7]  }
  0x5a   : > { %2555 = vmatprep.mubr.msk.f32.mxu1 %vm513_vm0, %v3187_v8  ;;  %2558 = vmatprep.subr.mxu1 %v2964_v13  ;;  %s2892_s19 = sshll.u32 %s2974_s16, 4  ;;  %s2893_s19 = int_to_ptr.vmem [resolvable:$false] %s2892_s19 }
  0x5b   : > { %s2894_s22 = scalar_lea.vmem %s2893_s19, 512 }
  0x5c   : > { %2556 = vmatmul.mubr.msk.f32.vlgmr.msra.gmra.mrb[0].mxu1 %vm513_vm0, %v3191_v10 }
  0x5d   : > { %2560 = vmatprep.mubr.msk.f32.mxu1 %vm2967_vm1, %v2964_v13 }
 0x12f   : > { %v2557_v12 = vpop.f32.mrb[0].mxu1 }
 0x130   : > { %v586_v14 = vpop.f32.mrb[1].mxu1  ;;  %v3208_v16 = vadd.f32 %v2557_v12, %v2441_v11 }
 0x131   : > { %v3200_v15 = vadd.f32 %v2441_v11, %v586_v14 }
 0x133   : > { %601 = vrot.lane.b32.xlu1 %v3200_v15, %s2965_s24  ;;  %597 = vrot.lane.b32.xlu0 %v3200_v15, %s2966_s25 }
 0x137   : > { %603 = vrot.lane.b32.xlu1 %v3208_v16, %s2965_s24  ;;  %599 = vrot.lane.b32.xlu0 %v3208_v16, %s2966_s25  ;;  %s2971_s24 = smov 8   ;;  %s2972_s25 = smov 16  }
 0x13b   : > { %607 = vrot.lane.b32.xlu1 %v3208_v16, %s2968_s21  ;;  %605 = vrot.lane.b32.xlu0 %v3200_v15, %s2968_s21  ;;  %s2973_s21 = smov 24  }
 0x13f   : > { %686 = vrot.lane.b32.xlu1 %v3208_v16, %s2969_s26  ;;  %609 = vrot.lane.b32.xlu0 %v3200_v15, %s2969_s26 }
 0x1a5   : > { %v3216_v17 = vpop.permute.xlu1 %601  ;;  %v3218_v18 = vpop.permute.xlu0 %597 }
 0x1a6   : > { %762 = vrot.lane.b32.xlu0 %v3218_v18, %s2969_s26 }
 0x1a9   : > { %v3221_v19 = vpop.permute.xlu1 %603  ;;  %v3223_v20 = vpop.permute.xlu0 %599 }
 0x1aa   : > { %914 = vrot.lane.b32.xlu0 %v3216_v17, %s2969_s26  ;;  %838 = vrot.lane.b32.xlu1 %v3223_v20, %s2969_s26 }
 0x1ad   : > { %v3227_v21 = vpop.permute.xlu0 %605  ;;  %v3231_v22 = vpop.permute.xlu1 %607 }
 0x1ae   : > { %990 = vrot.lane.b32.xlu1 %v3221_v19, %s2969_s26  ;;  %1066 = vrot.lane.b32.xlu0 %v3227_v21, %s2969_s26 }
 0x1b1   : > { %v610_v23 = vpop.permute.xlu0 %609  ;;  %v687_v24 = vpop.permute.xlu1 %686 }
 0x1b2   : > { %1142 = vrot.lane.b32.xlu1 %v3231_v22, %s2969_s26  ;;  %2559 = vmatpush3.xpose.msk.msra.mxu1 %vm611_vm2, %v610_v23 }
 0x1b3   : > { %2563 = vmatprep.subr.mxu1 %v2964_v13 }
 0x1b5   : > { %2561 = vmatmul.mubr.msk.f32.vlgmr.msra.gmra.mrb[2].mxu1 %vm611_vm2, %v3200_v15 }
 0x1b6   : > { %2564 = vmatpush3.xpose.msk.msra.mxu1 %vm611_vm2, %v687_v24  ;;  %2565 = vmatprep.mubr.msk.f32.mxu1 %vm2967_vm1, %v2964_v13 }
 0x1b7   : > { %2573 = vmatprep.subr.mxu1 %v2964_v13 }
 0x1b9   : > { %2566 = vmatmul.mubr.msk.f32.vlgmr.msra.gmra.mrb[4].mxu1 %vm611_vm2, %v3208_v16 }
 0x1ba   : > { %2575 = vmatprep.mubr.msk.f32.mxu1 %vm2967_vm1, %v2964_v13 }
 0x218   : > { %v763_v25 = vpop.permute.xlu0 %762 }
 0x219   : > { %2569 = vmatpush3.xpose.msk.msra.mxu0 %vm611_vm2, %v763_v25 }
 0x21a   : > { %2578 = vmatprep.subr.mxu0 %v2964_v13 }
 0x21c   : > { %v839_v26 = vpop.permute.xlu1 %838  ;;  %2571 = vmatmul.mubr.msk.f32.vlgmr.msra.gmra.mrb[0].mxu0 %vm611_vm2, %v3218_v18  ;;  %v915_v27 = vpop.permute.xlu0 %914 }
 0x21d   : > { %2574 = vmatpush3.xpose.msk.msra.mxu1 %vm611_vm2, %v839_v26  ;;  %2579 = vmatpush3.xpose.msk.msra.mxu0 %vm611_vm2, %v915_v27 }
 0x21e   : > { %2580 = vmatprep.mubr.msk.f32.mxu0 %vm2967_vm1, %v2964_v13  ;;  %2583 = vmatprep.subr.mxu1 %v2964_v13 }
 0x21f   : > { %2588 = vmatprep.subr.mxu0 %v2964_v13 }
 0x220   : > { %v991_v28 = vpop.permute.xlu1 %990  ;;  %2576 = vmatmul.mubr.msk.f32.vlgmr.msra.gmra.mrb[6].mxu1 %vm611_vm2, %v3223_v20  ;;  %2581 = vmatmul.mubr.msk.f32.vlgmr.msra.gmra.mrb[2].mxu0 %vm611_vm2, %v3216_v17  ;;  %v1067_v29 = vpop.permute.xlu0 %1066 }
 0x221   : > { %2584 = vmatpush3.xpose.msk.msra.mxu1 %vm611_vm2, %v991_v28  ;;  %2589 = vmatpush3.xpose.msk.msra.mxu0 %vm611_vm2, %v1067_v29 }
 0x222   : > { %2585 = vmatprep.mubr.msk.f32.mxu1 %vm2967_vm1, %v2964_v13  ;;  %2590 = vmatprep.mubr.msk.f32.mxu0 %vm2967_vm1, %v2964_v13 }
 0x223   : > { %2593 = vmatprep.subr.mxu1 %v2964_v13  ;;  %2598 = vmatprep.subr.mxu0 %v2964_v13 }
 0x224   : > { %v1143_v30 = vpop.permute.xlu1 %1142  ;;  %2586 = vmatmul.mubr.msk.f32.vlgmr.msra.gmra.mrb[8].mxu1 %vm611_vm2, %v3221_v19  ;;  %2591 = vmatmul.mubr.msk.f32.vlgmr.msra.gmra.mrb[4].mxu0 %vm611_vm2, %v3227_v21 }
 0x225   : > { %2594 = vmatpush3.xpose.msk.msra.mxu1 %vm611_vm2, %v1143_v30  ;;  %2595 = vmatprep.mubr.msk.f32.mxu1 %vm2967_vm1, %v2964_v13 }
 0x226   : > { %2603 = vmatprep.subr.mxu1 %v2964_v13  ;;  %2600 = vmatprep.mubr.msk.f32.mxu0 %vm2967_vm1, %v2964_v13 }
 0x228   : > { %2596 = vmatmul.mubr.msk.f32.vlgmr.msra.gmra.mrb[10].mxu1 %vm611_vm2, %v3231_v22 }
 0x229   : > { %2605 = vmatprep.mubr.msk.f32.mxu1 %vm2967_vm1, %v2964_v13 }
 0x288   : > { %v682_v31 = vpop.f32.mrb[2].mxu1 }
 0x289   : > { %v1218_v32 = vmul.f32 0.35355338, %v682_v31  ;;  %v2562_v33 = vpop.f32.mrb[3].mxu1 }
 0x28b   : > { %v1226_v34 = vsel %vm611_vm2, %v1218_v32, -inf }
 0x28c   : > { %1227 = vmax.xlane.f32.xlu0 %v1226_v34  ;;  %v758_v35 = vpop.f32.mrb[4].mxu1 }
 0x28d   : > { %v1219_v36 = vmul.f32 0.35355338, %v758_v35  ;;  %v2567_v37 = vpop.f32.mrb[5].mxu1 }
 0x28f   : > { %v1229_v38 = vsel %vm611_vm2, %v1219_v36, -inf }
 0x290   : > { %1230 = vmax.xlane.f32.xlu1 %v1229_v38 }
 0x2ef   : > { %v834_v39 = vpop.f32.mrb[0].mxu0 }
 0x2f0   : > { %v1220_v40 = vmul.f32 0.35355338, %v834_v39  ;;  %v2572_v41 = vpop.f32.mrb[1].mxu0 }
 0x2f2   : > { %v1232_v42 = vsel %vm611_vm2, %v1220_v40, -inf }
 0x2f3   : > { %v910_v43 = vpop.f32.mrb[6].mxu1  ;;  %1233 = vmax.xlane.f32.xlu0 %v1232_v42  ;;  %v986_v44 = vpop.f32.mrb[2].mxu0 }
 0x2f4   : > { %v1221_v45 = vmul.f32 0.35355338, %v910_v43  ;;  %v1222_v46 = vmul.f32 0.35355338, %v986_v44  ;;  %v2577_v47 = vpop.f32.mrb[7].mxu1  ;;  %v2582_v48 = vpop.f32.mrb[3].mxu0 }
 0x2f6   : > { %v1235_v49 = vsel %vm611_vm2, %v1221_v45, -inf  ;;  %v1238_v50 = vsel %vm611_vm2, %v1222_v46, -inf }
 0x2f7   : > { %v1062_v51 = vpop.f32.mrb[8].mxu1  ;;  %1236 = vmax.xlane.f32.xlu0 %v1235_v49  ;;  %1239 = vmax.xlane.f32.xlu1 %v1238_v50  ;;  %v1138_v52 = vpop.f32.mrb[4].mxu0 }
 0x2f8   : > { %v1223_v53 = vmul.f32 0.35355338, %v1062_v51  ;;  %v1224_v54 = vmul.f32 0.35355338, %v1138_v52  ;;  %v2587_v55 = vpop.f32.mrb[9].mxu1  ;;  %v2592_v56 = vpop.f32.mrb[5].mxu0 }
 0x2fa   : > { %v1241_v57 = vsel %vm611_vm2, %v1223_v53, -inf  ;;  %v1244_v58 = vsel %vm611_vm2, %v1224_v54, -inf }
 0x2fb   : > { %v1214_v59 = vpop.f32.mrb[10].mxu1  ;;  %1242 = vmax.xlane.f32.xlu0 %v1241_v57  ;;  %1245 = vmax.xlane.f32.xlu1 %v1244_v58 }
 0x2fc   : > { %v1225_v60 = vmul.f32 0.35355338, %v1214_v59  ;;  %v2597_v61 = vpop.f32.mrb[11].mxu1 }
 0x2fe   : > { %v1247_v62 = vsel %vm611_vm2, %v1225_v60, -inf }
 0x2ff   : > { %1248 = vmax.xlane.f32.xlu0 %v1247_v62 }
 0x30c   : > { %1314 = vrot.lane.b32.xlu1 %v3200_v15, %s2970_s28 }
 0x310   : > { %1466 = vrot.lane.b32.xlu1 %v3218_v18, %s2970_s28 }
 0x314   : > { %1542 = vrot.lane.b32.xlu1 %v3223_v20, %s2970_s28 }
 0x315   : > { %1390 = vrot.lane.b32.xlu0 %v3208_v16, %s2970_s28 }
 0x318   : > { %1694 = vrot.lane.b32.xlu1 %v3221_v19, %s2970_s28 }
 0x319   : > { %1618 = vrot.lane.b32.xlu0 %v3216_v17, %s2970_s28  ;;  %v1228_v1 = vpop.xlane.xlu0 %1227 }
 0x31a   : > { %v1250_v2 = vsub.f32 %v1218_v32, %v1228_v1 }
 0x31c   : > { %v1258_v4 = vmul.f32 1.442695, %v1250_v2 }
 0x31d   : > { %v1231_v63 = vpop.xlane.xlu1 %1230 }
 0x31e   : > { %v1251_v0 = vsub.f32 %v1219_v36, %v1231_v63 }
 0x320   : > { %v1260_v3 = vmul.f32 1.442695, %v1251_v0 }
 0x322   : > { %2792 = vpow2.f32 %v1260_v3 }
 0x323   : > { %2794 = vpow2.f32 %v1258_v4 }
 0x32c   : > { %v3302_v5 = vpop.eup %2792 }
 0x32d   : > { %v1277_v6 = vsel %vm611_vm2, %v3302_v5, 0.0  ;;  %v3306_v7 = vpop.eup %2794 }
 0x32e   : > { %v1274_v9 = vsel %vm611_vm2, %v3306_v7, 0.0 }
 0x338   : > { %1278 = vadd.xlane.f32.xlu0 %v1277_v6 }
 0x33c   : > { %1275 = vadd.xlane.f32.xlu1 %v1274_v9 }
 0x380   : > { %v1234_v11 = vpop.xlane.xlu0 %1233 }
 0x381   : > { %v1252_v12 = vsub.f32 %v1220_v40, %v1234_v11 }
 0x383   : > { %v1262_v14 = vmul.f32 1.442695, %v1252_v12 }
 0x384   : > { %v1240_v15 = vpop.xlane.xlu1 %1239  ;;  %v1237_v16 = vpop.xlane.xlu0 %1236 }
 0x385   : > { %2796 = vpow2.f32 %v1262_v14  ;;  %v1254_v17 = vsub.f32 %v1222_v46, %v1240_v15  ;;  %v1253_v18 = vsub.f32 %v1221_v45, %v1237_v16 }
 0x387   : > { %v1266_v19 = vmul.f32 1.442695, %v1254_v17  ;;  %v1264_v20 = vmul.f32 1.442695, %v1253_v18  ;;  %v1954_v17 = vld [vmem:[%s3484_s4] sm:$0xff]  ;;  %v1955_v18 = vld [vmem:[%s3484_s4 + $0x8] sm:$0xff] }
 0x388   : > { %v1246_v23 = vpop.xlane.xlu1 %1245  ;;  %v1243_v24 = vpop.xlane.xlu0 %1242 }
 0x389   : > { %2798 = vpow2.f32 %v1266_v19  ;;  %v1256_v25 = vsub.f32 %v1224_v54, %v1246_v23  ;;  %v1255_v26 = vsub.f32 %v1223_v53, %v1243_v24  ;;  %v2687_v19 = vpack.c.bf16 %v1955_v18, %v1954_v17 }
 0x38a   : > { %2800 = vpow2.f32 %v1264_v20  ;;  %v1957_v20 = vld [vmem:[%s3484_s4 + $0x18] sm:$0xff] }
 0x38b   : > { %v1270_v27 = vmul.f32 1.442695, %v1256_v25  ;;  %v1268_v28 = vmul.f32 1.442695, %v1255_v26 }
 0x38c   : > { %v1315_v29 = vpop.permute.xlu1 %1314  ;;  %v1249_v30 = vpop.xlane.xlu0 %1248 }
 0x38d   : > { %2802 = vpow2.f32 %v1270_v27  ;;  %v1257_v31 = vsub.f32 %v1225_v60, %v1249_v30  ;;  %2599 = vmatpush3.msra.mxu0 %v1315_v29 }
 0x38e   : > { %2804 = vpow2.f32 %v1268_v28  ;;  %2608 = vmatprep.subr.mxu0 %v2964_v13 }
 0x38f   : > { %v2797_v32 = vpop.eup %2796  ;;  %v1272_v33 = vmul.f32 1.442695, %v1257_v31 }
 0x390   : > { %v1391_v34 = vpop.permute.xlu0 %1390  ;;  %v1280_v35 = vsel %vm611_vm2, %v2797_v32, 0.0  ;;  %v1467_v46 = vpop.permute.xlu1 %1466 }
 0x391   : > { %2806 = vpow2.f32 %v1272_v33  ;;  %1281 = vadd.xlane.f32.xlu1 %v1280_v35  ;;  %2604 = vmatpush3.msra.mxu1 %v1391_v34 }
 0x392   : > { %2613 = vmatprep.subr.mxu1 %v2964_v13 }
 0x393   : > { %v2799_v36 = vpop.eup %2798 }
 0x394   : > { %v2801_v37 = vpop.eup %2800  ;;  %v1286_v38 = vsel %vm611_vm2, %v2799_v36, 0.0  ;;  %v1543_v47 = vpop.permute.xlu1 %1542 }
 0x395   : > { %1287 = vadd.xlane.f32.xlu1 %v1286_v38  ;;  %v1283_v39 = vsel %vm611_vm2, %v2801_v37, 0.0  ;;  %v1619_v48 = vpop.permute.xlu0 %1618 }
 0x396   : > { %1284 = vadd.xlane.f32.xlu0 %v1283_v39 }
 0x397   : > { %v2803_v40 = vpop.eup %2802 }
 0x398   : > { %v2805_v41 = vpop.eup %2804  ;;  %v1292_v42 = vsel %vm611_vm2, %v2803_v40, 0.0  ;;  %v1695_v49 = vpop.permute.xlu1 %1694 }
 0x399   : > { %1293 = vadd.xlane.f32.xlu1 %v1292_v42  ;;  %v1289_v43 = vsel %vm611_vm2, %v2805_v41, 0.0 }
 0x39a   : > { %1290 = vadd.xlane.f32.xlu0 %v1289_v43 }
 0x39b   : > { %v3317_v44 = vpop.eup %2806 }
 0x39c   : > { %v1295_v45 = vsel %vm611_vm2, %v3317_v44, 0.0 }
 0x39e   : > { %1296 = vadd.xlane.f32.xlu0 %v1295_v45 }
 0x3aa   : > { %1846 = vrot.lane.b32.xlu1 %v3231_v22, %s2970_s28 }
 0x3b4   : > { %1770 = vrot.lane.b32.xlu0 %v3227_v21, %s2970_s28  ;;  %s3432_s28 = scalar_lea.hbm %s3494_s14, %s2486_s20 }
 0x3c5   : > { %v1279_v50 = vpop.xlane.xlu0 %1278 }
 0x3c6   : > { %2808 = vrcp.f32 %v1279_v50 }
 0x3c9   : > { %v1276_v51 = vpop.xlane.xlu1 %1275 }
 0x3ca   : > { %2810 = vrcp.f32 %v1276_v51 }
 0x3d0   : > { %v2809_v52 = vpop.eup %2808 }
 0x3d1   : > { %v1307_v53 = vmul.f32 %v2809_v52, %v3302_v5 }
 0x3d3   : > { %2606 = vmatmul.mubr.msk.f32.vlgmr.msra.gmra.mrb[12].mxu1 %vm611_vm2, %v1307_v53 }
 0x3d4   : > { %v2811_v54 = vpop.eup %2810  ;;  %2614 = vmatpush3.msra.mxu1 %v1543_v47  ;;  %2615 = vmatprep.mubr.msk.f32.mxu1 %vm2967_vm1, %v2964_v13 }
 0x3d5   : > { %v1306_v21 = vmul.f32 %v2811_v54, %v3306_v7  ;;  %2623 = vmatprep.subr.mxu1 %v2964_v13 }
 0x3d7   : > { %2601 = vmatmul.mubr.msk.f32.vlgmr.msra.gmra.mrb[6].mxu0 %vm611_vm2, %v1306_v21 }
 0x3d8   : > { %2609 = vmatpush3.msra.mxu0 %v1467_v46  ;;  %2610 = vmatprep.mubr.msk.f32.mxu0 %vm2967_vm1, %v2964_v13 }
 0x3d9   : > { %2618 = vmatprep.subr.mxu0 %v2964_v13 }
 0x41e   : > { %v1282_v22 = vpop.xlane.xlu1 %1281 }
 0x41f   : > { %2812 = vrcp.f32 %v1282_v22 }
 0x422   : > { %v1288_v55 = vpop.xlane.xlu1 %1287 }
 0x423   : > { %2814 = vrcp.f32 %v1288_v55  ;;  %v1285_v56 = vpop.xlane.xlu0 %1284 }
 0x424   : > { %2816 = vrcp.f32 %v1285_v56 }
 0x426   : > { %v1294_v57 = vpop.xlane.xlu1 %1293 }
 0x427   : > { %2818 = vrcp.f32 %v1294_v57  ;;  %v1291_v58 = vpop.xlane.xlu0 %1290 }
 0x428   : > { %2820 = vrcp.f32 %v1291_v58 }
 0x429   : > { %v2813_v59 = vpop.eup %2812 }
 0x42a   : > { %v1308_v60 = vmul.f32 %v2813_v59, %v2797_v32  ;;  %v1847_v7 = vpop.permute.xlu1 %1846 }
 0x42b   : > { %v1297_v61 = vpop.xlane.xlu0 %1296 }
 0x42c   : > { %2822 = vrcp.f32 %v1297_v61  ;;  %2611 = vmatmul.mubr.msk.f32.vlgmr.msra.gmra.mrb[8].mxu0 %vm611_vm2, %v1308_v60 }
 0x42d   : > { %v2815_v62 = vpop.eup %2814  ;;  %2619 = vmatpush3.msra.mxu0 %v1619_v48  ;;  %2620 = vmatprep.mubr.msk.f32.mxu0 %vm2967_vm1, %v2964_v13  ;;  %v2468_v48 = vld [vmem:[%s3485_s5] ss:$0 sm:$0xff] }
 0x42e   : > { %v2817_v63 = vpop.eup %2816  ;;  %v1310_v0 = vmul.f32 %v2815_v62, %v2799_v36  ;;  %2628 = vmatprep.subr.mxu0 %v2964_v13 }
 0x42f   : > { %v1309_v1 = vmul.f32 %v2817_v63, %v2801_v37  ;;  %v1771_v2 = vpop.permute.xlu0 %1770 }
 0x430   : > { %2621 = vmatmul.mubr.msk.f32.vlgmr.msra.gmra.mrb[10].mxu0 %vm611_vm2, %v1310_v0  ;;  %v2094_v0 = vld [vmem:[#allocation5 + $0x8] sm:$0xff] }
 0x431   : > { %v2819_v3 = vpop.eup %2818  ;;  %2616 = vmatmul.mubr.msk.f32.vlgmr.msra.gmra.mrb[14].mxu1 %vm611_vm2, %v1309_v1  ;;  %2629 = vmatpush3.msra.mxu0 %v1771_v2  ;;  %v2095_v2 = vld [vmem:[#allocation5 + $0x10] sm:$0xff] }
 0x432   : > { %v2821_v4 = vpop.eup %2820  ;;  %v1312_v5 = vmul.f32 %v2819_v3, %v2803_v40  ;;  %2624 = vmatpush3.msra.mxu1 %v1695_v49  ;;  %2625 = vmatprep.mubr.msk.f32.mxu1 %vm2967_vm1, %v2964_v13  ;;  %v2096_v3 = vld [vmem:[#allocation5 + $0x18] sm:$0xff] }
 0x433   : > { %v1311_v6 = vmul.f32 %v2821_v4, %v2805_v41  ;;  %2630 = vmatprep.mubr.msk.f32.mxu0 %vm2967_vm1, %v2964_v13  ;;  %2633 = vmatprep.subr.mxu1 %v2964_v13  ;;  %v2699_v4 = vpack.c.bf16 %v2096_v3, %v2095_v2  ;;  %v2479_v2 = vld [vmem:[%s3492_s12] ss:$0 sm:$0xff] }
 0x434   : > { %2631 = vmatmul.mubr.msk.f32.vlgmr.msra.gmra.mrb[12].mxu0 %vm611_vm2, %v1312_v5  ;;  %2688 = vmatprep.subr.bf16.mxu0 %v2687_v19  ;;  %v2187_v5 = vld [vmem:[%s3490_s10] sm:$0xff] }
 0x435   : > { %2626 = vmatmul.mubr.msk.f32.vlgmr.msra.gmra.mrb[16].mxu1 %vm611_vm2, %v1311_v6  ;;  %2690 = vmatpush3.bf16.msra.mxu0 %v2687_v19  ;;  %v2188_v6 = vld [vmem:[%s3490_s10 + $0x8] sm:$0xff] }
 0x436   : > { %v2823_v9 = vpop.eup %2822  ;;  %2634 = vmatpush3.msra.mxu1 %v1847_v7  ;;  %2635 = vmatprep.mubr.msk.f32.mxu1 %vm2967_vm1, %v2964_v13  ;;  %v1956_v13 = vld [vmem:[%s3484_s4 + $0x10] sm:$0xff] }
 0x437   : > { %v1313_v11 = vmul.f32 %v2823_v9, %v3317_v44  ;;  %v2691_v23 = vpack.c.bf16 %v1957_v20, %v1956_v13  ;;  %v2189_v7 = vld [vmem:[%s3490_s10 + $0x10] sm:$0xff]  ;;  %v2703_v9 = vpack.c.bf16 %v2188_v6, %v2187_v5  ;;  %v2480_v5 = vld [vmem:[%s3493_s13] ss:$0 sm:$0xff] }
 0x439   : > { %2636 = vmatmul.mubr.msk.f32.vlgmr.msra.gmra.mrb[18].mxu1 %vm611_vm2, %v1313_v11  ;;  %2692 = vmatprep.subr.bf16.mxu0 %v2691_v23  ;;  %v2190_v11 = vld [vmem:[%s3490_s10 + $0x18] sm:$0xff] }
 0x43a   : > { %2694 = vmatpush3.bf16.msra.mxu0 %v2691_v23 }
 0x43b   : > { %2704 = vmatprep.subr.bf16.mxu0 %v2703_v9 }
 0x4a6   : > { %v1462_v12 = vpop.f32.mrb[12].mxu1 }
 0x4a7   : > { %v2607_v14 = vpop.f32.mrb[13].mxu1 }
 0x4a8   : > { %v2191_v14 = vld [vmem:[%s3490_s10 + $0x20] sm:$0xff] }
 0x4aa   : > { %v1386_v15 = vpop.f32.mrb[6].mxu0 }
 0x4ab   : > { %v2602_v16 = vpop.f32.mrb[7].mxu0 }
 0x4ff   : > { %v1538_v24 = vpop.f32.mrb[8].mxu0 }
 0x500   : > { %v2612_v25 = vpop.f32.mrb[9].mxu0  ;;  %1924 = vrot.lane.b32.xlu0 %v1538_v24, %s2971_s24 }
 0x501   : > { %v2471_v25 = vld [vmem:[%s3486_s6] ss:$0 sm:$0xff] }
 0x503   : > { %v1690_v26 = vpop.f32.mrb[10].mxu0 }
 0x504   : > { %v1614_v27 = vpop.f32.mrb[14].mxu1  ;;  %1932 = vrot.lane.b32.xlu0 %v1690_v26, %s2972_s25  ;;  %v2622_v28 = vpop.f32.mrb[11].mxu0 }
 0x505   : > { %1926 = vrot.lane.b32.xlu1 %v1614_v27, %s2971_s24  ;;  %v2617_v29 = vpop.f32.mrb[15].mxu1  ;;  %v2472_v27 = vld [vmem:[%s3487_s7] ss:$0 sm:$0xff] }
 0x507   : > { %v1842_v30 = vpop.f32.mrb[12].mxu0 }
 0x508   : > { %v1766_v31 = vpop.f32.mrb[16].mxu1  ;;  %1940 = vrot.lane.b32.xlu0 %v1842_v30, %s2973_s21  ;;  %v2632_v32 = vpop.f32.mrb[13].mxu0 }
 0x509   : > { %1934 = vrot.lane.b32.xlu1 %v1766_v31, %s2972_s25  ;;  %v2627_v33 = vpop.f32.mrb[17].mxu1  ;;  %s2346_s25 = sshll.u32 %s489_s18, 4  ;;  %s3434_s25 = int_to_ptr.vmem [resolvable:$true] %s2346_s25 }
 0x50a   : > { %s2888_s27 = scalar_lea.vmem %s3434_s25, 256  ;;  %p2895_p4 = scmp.lt.s32.totalorder %s3434_s25, %s2893_s19 }
 0x50b   : > { %p2889_p12 = scmp.ne.s32.totalorder %s3434_s25, %s2888_s27  ;;  %p2896_p7 = scmp.lt.s32.totalorder %s2894_s22, %s2888_s27 }
 0x50c   : > { %v1918_v34 = vpop.f32.mrb[18].mxu1 }
 0x50d   : > { %1942 = vrot.lane.b32.xlu1 %v1918_v34, %s2973_s21  ;;  %v2637_v35 = vpop.f32.mrb[19].mxu1  ;;  %v2193_v34 = vld [vmem:[%s3490_s10 + $0x30] sm:$0xff]  ;;  %p2890_p2 = pnand %p2889_p12, %p3519_p1  ;;  %p2897_p8 = por %p2896_p7, %p2895_p4 }
 0x50e   : > { %v2194_v35 = vld [vmem:[%s3490_s10 + $0x38] sm:$0xff] }
 0x50f   : > { %p2891_p3 = pneg %p2890_p2 }
 0x511   : > { %p2898_p11 = pnand %p2897_p8, %p2891_p3 }
 0x572   : > { %v1925_v36 = vpop.permute.xlu0 %1924 }
 0x573   : > { %v1946_v39 = vsel %vm611_vm2, %v1386_v15, %v1925_v36  ;;  %v2192_v15 = vld [vmem:[%s3490_s10 + $0x28] sm:$0xff]  ;;  %v2715_v36 = vpack.c.bf16 %v2194_v35, %v2193_v34 }
 0x574   : > { %v2711_v16 = vpack.c.bf16 %v2192_v15, %v2191_v14 }
 0x576   : > { %v1933_v37 = vpop.permute.xlu0 %1932 }
 0x577   : > { %v1927_v38 = vpop.permute.xlu1 %1926  ;;  %v1949_v40 = vsel %vm1948_vm3, %v1946_v39, %v1933_v37  ;;  %v2473_v37 = vld [vmem:[%s3489_s9] ss:$0 sm:$0xff] }
 0x578   : > { %v1947_v44 = vsel %vm611_vm2, %v1462_v12, %v1927_v38  ;;  %v2707_v12 = vpack.c.bf16 %v2190_v11, %v2189_v7 }
 0x57a   : > { %v1941_v41 = vpop.permute.xlu0 %1940 }
 0x57b   : > { %v1935_v42 = vpop.permute.xlu1 %1934  ;;  %v1952_v43 = vsel %vm1951_vm4, %v1949_v40, %v1941_v41 }
 0x57c   : > { %2646 = vmatprep.mubr.msk.f32.mxu0 %vm513_vm0, %v1952_v43  ;;  %v1950_v45 = vsel %vm1948_vm3, %v1947_v44, %v1935_v42  ;;  %v2476_v44 = vld [vmem:[%s3491_s11] ss:$0 sm:$0xff] }
 0x57f   : > { %v1943_v46 = vpop.permute.xlu1 %1942 }
 0x580   : > { %v1953_v47 = vsel %vm1951_vm4, %v1950_v45, %v1943_v46 }
 0x581   : > { %2647 = vmatmul.mubr.msk.f32.vlgmr.msra.gmra.mrb[14].mxu0 %vm513_vm0, %v1953_v47 }
 0x582   : > { %2706 = vmatpush3.bf16.msra.mxu0 %v2703_v9 }
 0x583   : > { %2708 = vmatprep.subr.bf16.mxu0 %v2707_v12 }
 0x586   : > { %2710 = vmatpush3.bf16.msra.mxu0 %v2707_v12 }
 0x587   : > { %2712 = vmatprep.subr.bf16.mxu0 %v2711_v16 }
 0x58a   : > { %2714 = vmatpush3.bf16.msra.mxu0 %v2711_v16 }
 0x58b   : > { %2716 = vmatprep.subr.bf16.mxu0 %v2715_v36 }
 0x58e   : > { %2718 = vmatpush3.bf16.msra.mxu0 %v2715_v36 }
 0x654   : > { %v2648_v49 = vpop.f32.mrb[14].mxu0 }
 0x655   : > { %v2043_v50 = vadd.f32 %v2648_v49, %v2468_v48  ;;  %v2037_v51 = vpop.f32.mrb[15].mxu0 }
 0x656   : > { %v2038_v52 = vadd.f32 %v2468_v48, %v2037_v51 }
 0x657   : > { %v2047_v53 = vadd.f32 %v2043_v50, %v3191_v10 }
 0x658   : > { %v2046_v54 = vadd.f32 %v2038_v52, %v3187_v8  ;;  %v2093_v8 = vld [vmem:[#allocation5] sm:$0xff] }
 0x659   : > { %v2053_v21 = vsel %vm513_vm0, %v2047_v53, 0.0  ;;  %v2695_v1 = vpack.c.bf16 %v2094_v0, %v2093_v8 }
 0x65a   : > { %2054 = vadd.xlane.f32.xlu1 %v2053_v21  ;;  %v2050_v22 = vsel %vm513_vm0, %v2046_v54, 0.0 }
 0x65b   : > { %2051 = vadd.xlane.f32.xlu0 %v2050_v22  ;;  %2696 = vmatprep.subr.bf16.mxu1 %v2695_v1 }
 0x65c   : > { %2698 = vmatpush3.bf16.msra.mxu1 %v2695_v1 }
 0x65d   : > { %2700 = vmatprep.subr.bf16.mxu1 %v2699_v4 }
 0x660   : > { %2702 = vmatpush3.bf16.msra.mxu1 %v2699_v4 }
 0x6e7   : > { %v2055_v55 = vpop.xlane.xlu1 %2054 }
 0x6e8   : > { %v2058_v56 = vmul.f32 0.03125, %v2055_v55  ;;  %v2052_v57 = vpop.xlane.xlu0 %2051 }
 0x6e9   : > { %v2057_v58 = vmul.f32 0.03125, %v2052_v57 }
 0x6ea   : > { %v2060_v59 = vsub.f32 %v2047_v53, %v2058_v56 }
 0x6eb   : > { %v2059_v60 = vsub.f32 %v2046_v54, %v2057_v58 }
 0x6ec   : > { %v2062_v63 = vmul.f32 %v2060_v59, %v2060_v59 }
 0x6ed   : > { %v2061_v61 = vmul.f32 %v2059_v60, %v2059_v60 }
 0x6ee   : > { %v2066_v10 = vsel %vm513_vm0, %v2062_v63, 0.0 }
 0x6ef   : > { %v2063_v62 = vsel %vm513_vm0, %v2061_v61, 0.0 }
 0x6f0   : > { %2064 = vadd.xlane.f32.xlu0 %v2063_v62 }
 0x6f4   : > { %2067 = vadd.xlane.f32.xlu0 %v2066_v10 }
 0x77d   : > { %v2065_v17 = vpop.xlane.xlu0 %2064 }
 0x77e   : > { %v2069_v18 = vmul.f32 0.03125, %v2065_v17 }
 0x780   : > { %v2071_v19 = vadd.f32 1e-05, %v2069_v18 }
 0x781   : > { %v2068_v13 = vpop.xlane.xlu0 %2067 }
 0x782   : > { %2824 = vrsqrt.f32 %v2071_v19  ;;  %v2070_v20 = vmul.f32 0.03125, %v2068_v13 }
 0x784   : > { %v2072_v23 = vadd.f32 1e-05, %v2070_v20 }
 0x786   : > { %2826 = vrsqrt.f32 %v2072_v23 }
 0x78c   : > { %v2825_v24 = vpop.eup %2824 }
 0x78d   : > { %v2075_v26 = vmul.f32 %v2825_v24, %v2059_v60 }
 0x78f   : > { %v2083_v28 = vmul.f32 %v2471_v25, %v2075_v26 }
 0x790   : > { %v2827_v29 = vpop.eup %2826 }
 0x791   : > { %v2076_v30 = vmul.f32 %v2827_v29, %v2060_v59  ;;  %v2091_v31 = vadd.f32 %v2472_v27, %v2083_v28 }
 0x793   : > { %v2084_v32 = vmul.f32 %v2471_v25, %v2076_v30  ;;  %2657 = vmatprep.mubr.msk.f32.mxu1 %vm513_vm0, %v2091_v31 }
 0x795   : > { %v2092_v33 = vadd.f32 %v2472_v27, %v2084_v32 }
 0x797   : > { %2658 = vmatmul.mubr.msk.f32.vlgmr.msra.gmra.mrb[20].mxu1 %vm513_vm0, %v2092_v33 }
 0x86a   : > { %v2659_v38 = vpop.f32.mrb[20].mxu1 }
 0x86b   : > { %v2182_v39 = vadd.f32 %v2659_v38, %v2473_v37  ;;  %v2176_v40 = vpop.f32.mrb[21].mxu1 }
 0x86c   : > { %v2177_v41 = vadd.f32 %v2473_v37, %v2176_v40 }
 0x86d   : > { %v2186_v43 = vmax.f32 %v2182_v39, 0.0 }
 0x86e   : > { %v2185_v42 = vmax.f32 %v2177_v41, 0.0 }
 0x870   : > { %2676 = vmatprep.mubr.msk.f32.mxu0 %vm2202_vm5, %v2185_v42 }
 0x871   : > { %2677 = vmatmul.mubr.msk.f32.vlgmr.msra.gmra.mrb[16].mxu0 %vm2202_vm5, %v2186_v43 }
 0x944   : > { %v2678_v45 = vpop.f32.mrb[16].mxu0 }
 0x945   : > { %v2281_v46 = vadd.f32 %v2678_v45, %v2476_v44  ;;  %v2275_v47 = vpop.f32.mrb[17].mxu0 }
 0x946   : > { %v2276_v48 = vadd.f32 %v2476_v44, %v2275_v47 }
 0x947   : > { %v2285_v49 = vadd.f32 %v2281_v46, %v2092_v33 }
 0x948   : > { %v2284_v50 = vadd.f32 %v2276_v48, %v2091_v31 }
 0x949   : > { %v2291_v51 = vsel %vm513_vm0, %v2285_v49, 0.0 }
 0x94a   : > { %2292 = vadd.xlane.f32.xlu0 %v2291_v51  ;;  %v2288_v52 = vsel %vm513_vm0, %v2284_v50, 0.0 }
 0x94b   : > { %2289 = vadd.xlane.f32.xlu1 %v2288_v52 }
 0x9d7   : > { %v2293_v53 = vpop.xlane.xlu0 %2292 }
 0x9d8   : > { %v2295_v54 = vmul.f32 0.03125, %v2293_v53  ;;  %v2290_v21 = vpop.xlane.xlu1 %2289 }
 0x9d9   : > { %v2294_v22 = vmul.f32 0.03125, %v2290_v21 }
 0x9da   : > { %v2297_v55 = vsub.f32 %v2285_v49, %v2295_v54 }
 0x9db   : > { %v2296_v56 = vsub.f32 %v2284_v50, %v2294_v22 }
 0x9dc   : > { %v2299_v57 = vmul.f32 %v2297_v55, %v2297_v55 }
 0x9dd   : > { %v2298_v58 = vmul.f32 %v2296_v56, %v2296_v56 }
 0x9de   : > { %v2303_v59 = vsel %vm513_vm0, %v2299_v57, 0.0 }
 0x9df   : > { %2304 = vadd.xlane.f32.xlu0 %v2303_v59  ;;  %v2300_v60 = vsel %vm513_vm0, %v2298_v58, 0.0 }
 0x9e0   : > { %2301 = vadd.xlane.f32.xlu1 %v2300_v60 }
 0xa6c   : > { %v2305_v61 = vpop.xlane.xlu0 %2304 }
 0xa6d   : > { %v2307_v62 = vmul.f32 0.03125, %v2305_v61  ;;  %v2302_v63 = vpop.xlane.xlu1 %2301 }
 0xa6e   : > { %v2306_v10 = vmul.f32 0.03125, %v2302_v63 }
 0xa6f   : > { %v2309_v8 = vadd.f32 1e-05, %v2307_v62 }
 0xa70   : > { %v2308_v0 = vadd.f32 1e-05, %v2306_v10 }
 0xa71   : > { %2828 = vrsqrt.f32 %v2309_v8 }
 0xa72   : > { %2830 = vrsqrt.f32 %v2308_v0 }
 0xa7b   : > { %v2829_v1 = vpop.eup %2828 }
 0xa7c   : > { %v2831_v3 = vpop.eup %2830  ;;  %v2313_v4 = vmul.f32 %v2829_v1, %v2297_v55 }
 0xa7d   : > { %v2312_v6 = vmul.f32 %v2831_v3, %v2296_v56 }
 0xa7e   : > { %v2321_v7 = vmul.f32 %v2479_v2, %v2313_v4 }
 0xa7f   : > { %v2320_v9 = vmul.f32 %v2479_v2, %v2312_v6 }
 0xa80   : > { %v2329_v11 = vadd.f32 %v2480_v5, %v2321_v7 }
 0xa81   : > { %v2328_v12 = vadd.f32 %v2480_v5, %v2320_v9 }
 0xa82   : > { %2331 = vst.msk [vmem:[%s489_s18 + $0x8] sm:$0xff] %vm513_vm0, %v2329_v11 }
 0xa83   : > { %2330 = vst.msk [vmem:[%s489_s18] sm:$0xff] %vm513_vm0, %v2328_v12 }
 0xa84   : > { %2901 = shalt.err (!%p2898_p11)
}
 0xa85   : > { %s2902_s29 = scalar_lea.hbm %s3432_s28, 256  ;;  %s2906_s18 = scalar_lea.hbm %s3494_s14, 512 }
 0xa86   : > { %p2903_p13 = scmp.ne.s32.totalorder %s3432_s28, %s2902_s29  ;;  %p2907_p5 = scmp.lt.u32.totalorder %s3432_s28, %s3494_s14 }
 0xa87   : > { %p2908_p9 = scmp.lt.u32.totalorder %s2906_s18, %s2902_s29  ;;  %p2910_p12 = scmp.lt.u32.totalorder %s2902_s29, %s3432_s28 }
 0xa88   : > { %p2904_p0 = pnand %p2903_p13, %p3519_p1 }
 0xa89   : > { %p2909_p10 = por %p2908_p9, %p2907_p5 }
 0xa8a   : > { %p2905_p6 = pneg %p2904_p0 }
 0xa8b   : > { %p2911_p2 = por %p2910_p12, %p2909_p10 }
 0xa8d   : > { %p2912_p3 = pnand %p2911_p2, %p2905_p6 }
 0xa8f   : > { %2915 = shalt.err (!%p2912_p3)
}
 0xa90   : > { %s2975_s27 = smov 128  }
 0xa91   : > { %2727 = dma.vmem_to_hbm [thread:$0]  (%p3519_p1), %s3434_s25, 256, %s3432_s28, %s3438_s17, %s2975_s27, %s2975_s27, %s2971_s24  }
 0xa92 PF: > { %s3520_s16 = sld [smem:[#allocation13_spill]]  ;;  %s3521_s19 = sld [smem:[#allocation11_spill]] }
 0xa93   : > { %s3522_s22 = sld [smem:[#allocation16_spill]] }
 0xa98   : > { %p2744_p4 = scmp.ge.s32.totalorder %s3520_s16, 2  ;;  %s2361_s15 = sand.u32 1, %s3521_s19  }
 0xa99   : > { %p3523_p7 = scmp.ne.s32.totalorder %s3522_s22, 0  ;;  %s2362_s29 = scalar_lea.sflag [#allocation4], %s2361_s15 }
 0xa9b   : > { %p2737_p8 = pnand %p2744_p4, %p3523_p7 }
 0xa9d   : > { %2941 = dma.done.wait (!%p2737_p8), %s2362_s29, 256  }
 0xa9e   : > { %2943 = vsyncadd (!%p2737_p8), %s2362_s29, 4294967040  ;;  %s3524_s16 = sld [smem:[#allocation14_spill]]  ;;  %s3525_s20 = sld [smem:[#allocation12_spill]] }
 0xa9f   : > { %s3526_s15 = sld [smem:[#allocation15_spill]]  ;;  %s3527_s29 = smov %s2950_s30 }
 0xaa4   : > { %p26_p11 = scmp.ge.s32.totalorder %s3524_s16, 4   ;;  %s3528_s30 = smov %s3525_s20 }
 0xaa6   :  { %28 = sbr.rel (!%p26_p11) target bundleno = 5 (0x5), region = 120 }
 0xaad   :  { %2367 = vsyncpa [#allocation3], 1 }
 0xaae   :  { %2369 = vsyncpa [#allocation3 + $0x1], 1 }
 0xaaf   :  { %2370 = vsyncpa [#allocation6], 1 }
 0xab0   :  { %2371 = vsyncpa [#allocation4], 1 }
 0xab1   :  { %2373 = vsyncpa [#allocation4 + $0x1], 1 }

</bundles_post_ra>
